<compile_context>
chip_gen: v7x
topology: tpu7x:2x2x1
jax: 0.10.0
libtpu: 0.0.40
codegen_flags: <defaults>
</compile_context>

<pallas_src>
import jax
import jax.numpy as jnp
from jax import lax
from jax.experimental import pallas as pl
from jax.experimental.pallas import tpu as pltpu


def _round_up(x, m):
    return ((x + m - 1) // m) * m


def _cdiv(a, b):
    return -(-a // b)


# ---------------------------------------------------------------------------
# Generation-aware sizing (v5e/v6e: 128 MiB VMEM, 1 TC; v7x: 64 MiB, 2 TCs)
# ---------------------------------------------------------------------------

def _hw_params():
    cap = None
    try:
        cap = int(getattr(pltpu.get_tpu_info(), "vmem_capacity_bytes"))
    except Exception:
        cap = None
    if cap is None:
        # Unknown backend: conservative, let the compiler keep its default limit.
        return {"vmem_limit": None, "budget": 16 << 20, "min_grid_steps": 2}
    if cap >= (100 << 20):                      # v5e / v6e: single TC, lots of VMEM
        lim = min(96 << 20, cap * 3 // 4)
        return {"vmem_limit": lim, "budget": min(64 << 20, lim * 2 // 3),
                "min_grid_steps": 2}
    # v7x (64 MiB) or other small-VMEM parts: keep headroom; prefer >= 4 "parallel"
    # batch steps so both TensorCores get pipelined work.
    lim = min(40 << 20, cap * 3 // 5)
    return {"vmem_limit": lim, "budget": max(4 << 20, lim * 3 // 5),
            "min_grid_steps": 4}


# ---------------------------------------------------------------------------
# Kernels
# ---------------------------------------------------------------------------

def _mask_last_axis(v, k, tk, nd):
    """Zero columns of v (last axis) whose global descriptor index >= nd."""
    col = k * tk + lax.broadcasted_iota(jnp.int32, v.shape, v.ndim - 1)
    return jnp.where(col < nd, v, jnp.zeros_like(v))


def _make_contig_kernel(mode, tk, nd, mxu_dot_dtype):
    """Contiguous path: grid = (batch_tiles, k_tiles) with an f32 accumulator over k."""
    need_mask = (nd % tk) != 0

    def kernel(d_ref, x_ref, o_ref, acc_ref):
        k = pl.program_id(1)
        nk = pl.num_programs(1)

        @pl.when(k == 0)
        def _():
            acc_ref[...] = jnp.zeros_like(acc_ref)

        if mode == "single":                       # d (TB,A3,TK), x (TB,TK) -> acc (TB,A3)
            d = d_ref[...].astype(jnp.float32)
            x = x_ref[...].astype(jnp.float32)
            p = d * x[:, None, :]
            if need_mask:
                p = _mask_last_axis(p, k, tk, nd)
            acc_ref[...] += jnp.sum(p, axis=-1)
        elif mode == "vpu_multi":                  # x (TB,NO,TK) -> acc (TB,NO,A3)
            d = d_ref[...].astype(jnp.float32)
            x = x_ref[...].astype(jnp.float32)
            if need_mask:
                d = _mask_last_axis(d, k, tk, nd)
                x = _mask_last_axis(x, k, tk, nd)
            for o in range(x.shape[1]):
                acc_ref[:, o, :] += jnp.sum(d * x[:, o, :][:, None, :], axis=-1)
        else:                                      # "mxu": x (TB,TK,NO) -> acc (TB,A3,NO)
            full_f32 = jnp.dtype(mxu_dot_dtype) == jnp.dtype(jnp.float32)
            cast_to = jnp.float32 if full_f32 else mxu_dot_dtype
            dd = d_ref[...].astype(cast_to)
            xx = x_ref[...].astype(cast_to)
            if need_mask:
                dd = _mask_last_axis(dd, k, tk, nd)
                row = k * tk + lax.broadcasted_iota(jnp.int32, xx.shape, 1)
                xx = jnp.where(row < nd, xx, jnp.zeros_like(xx))
            acc_ref[...] += lax.dot_general(
                dd, xx, (((2,), (1,)), ((0,), (0,))),
                preferred_element_type=jnp.float32,
                precision=(lax.Precision.HIGHEST if full_f32 else None))

        @pl.when(k == nk - 1)
        def _():
            o_ref[...] = acc_ref[...].astype(o_ref.dtype)

    return kernel


def _make_gather_kernel(mode, tb, mxu_dot_dtype):
    """ref_idx path: TB samples per grid step, manual double-buffered DMA gather of the
    per-sample (A3, ND) planes from HBM, indices read from the scalar-prefetched ref_idx."""

    def kernel(idx_ref, d_hbm, x_ref, o_ref, dbuf, sem):
        i = pl.program_id(0)
        nsteps = pl.num_programs(0)
        slot = i & 1

        def start_fetch(step, s):
            base = step * tb
            for t in range(tb):
                row = idx_ref[base + t]
                pltpu.make_async_copy(d_hbm.at[row], dbuf.at[s, t],
                                      sem.at[s, t]).start()

        @pl.when(i == 0)
        def _():
            start_fetch(0, 0)

        @pl.when(i + 1 < nsteps)                   # prefetch next step's samples
        def _():
            start_fetch(i + 1, 1 - slot)

        for t in range(tb):                        # wait for the current slot
            pltpu.make_async_copy(d_hbm.at[0], dbuf.at[slot, t],
                                  sem.at[slot, t]).wait()

        if mode == "single":
            d = dbuf[slot].astype(jnp.float32)     # (TB, A3, ND)
            x = x_ref[...].astype(jnp.float32)     # (TB, ND)
            o_ref[...] = jnp.sum(d * x[:, None, :], axis=-1).astype(o_ref.dtype)
        elif mode == "vpu_multi":
            d = dbuf[slot].astype(jnp.float32)
            x = x_ref[...].astype(jnp.float32)     # (TB, NO, ND)
            for o in range(x.shape[1]):
                o_ref[:, o, :] = jnp.sum(
                    d * x[:, o, :][:, None, :], axis=-1).astype(o_ref.dtype)
        else:                                      # "mxu": x (TB, ND, NO)
            full_f32 = jnp.dtype(mxu_dot_dtype) == jnp.dtype(jnp.float32)
            cast_to = jnp.float32 if full_f32 else mxu_dot_dtype
            dd = dbuf[slot].astype(cast_to)
            xx = x_ref[...].astype(cast_to)
            o_ref[...] = lax.dot_general(
                dd, xx, (((2,), (1,)), ((0,), (0,))),
                preferred_element_type=jnp.float32,
                precision=(lax.Precision.HIGHEST if full_f32 else None)
            ).astype(o_ref.dtype)

    return kernel


# ---------------------------------------------------------------------------
# Tile planning
# ---------------------------------------------------------------------------

def _tb_candidates(B, top, align8):
    """Descending batch-tile candidates. 2-D x/out blocks (mode 'single') need the
    second-to-last dim to be a multiple of 8 or equal to the full dim (the (8,128) rule)."""
    if align8 and B < 8:
        return [B]
    top = max(1, min(top, B))
    cands = []
    t = top
    while True:
        v = (t // 8) * 8 if t >= 8 else t
        if align8:
            v = max(8, v)
        v = max(1, min(v, B))
        if v not in cands:
            cands.append(v)
        if t == 1:
            break
        t //= 2
    return sorted(set(cands), reverse=True)


def _plan_contiguous(B, A3, ND, NO, mode, d_isz, x_isz, o_isz, budget,
                     min_grid_steps, max_tk=None):
    d_sl = 8 * max(1, 4 // d_isz)                  # sublane packing of the d dtype
    A3_d = _round_up(A3, d_sl)
    A3_8 = _round_up(A3, 8)
    A3_l = _round_up(A3, 128)
    NO_8 = _round_up(NO, 8)
    NO_l = _round_up(NO, 128)

    def need(tb, tk):
        tkl = _round_up(tk, 128)
        n = 2 * tb * A3_d * tkl * d_isz            # double-buffered d tiles
        n += tb * A3_8 * tkl * 4                   # f32 upcast / product intermediate
        if mode == "single":
            n += 2 * _round_up(tb, 8) * tkl * x_isz
            n += _round_up(tb, 8) * A3_l * 4                 # acc scratch
            n += 2 * _round_up(tb, 8) * A3_l * o_isz
        elif mode == "vpu_multi":
            n += 2 * tb * NO_8 * tkl * x_isz
            n += tb * NO_8 * A3_l * 4
            n += 2 * tb * NO_8 * A3_l * o_isz
        else:                                      # mxu
            n += 2 * tb * _round_up(tk, 8) * NO_l * x_isz
            n += tb * A3_8 * NO_l * 4
            n += 2 * tb * A3_8 * NO_l * o_isz
        return n

    tk_cands = [ND] + [t for t in (4096, 2048, 1024, 512, 256, 128) if t < ND]
    if max_tk is not None:
        tk_cands = [t for t in tk_cands if t <= max_tk] or [min(ND, 128)]
    tb_hi = max(1, _cdiv(B, min_grid_steps))
    tb_cands = _tb_candidates(B, tb_hi, align8=(mode == "single"))

    best = None
    for tk in tk_cands:
        for tb in tb_cands:                        # descending: first fit is the largest
            if need(tb, tk) <= budget:
                score = tb * min(tk, ND)           # maximize elements / grid step
                if best is None or score > best[0]:
                    best = (score, tb, tk)
                break
    if best is None:
        # nothing fits the soft budget: smallest legal tile (may overrun slightly)
        return tb_cands[-1], min(ND, 128)
    return best[1], best[2]


def _plan_gather(B, A3, ND, NO, mode, d_isz, x_isz, o_isz, budget):
    d_sl = 8 * max(1, 4 // d_isz)
    ndl = _round_up(ND, 128)
    per = 2 * _round_up(A3, d_sl) * ndl * d_isz    # double-buffered plane
    per += _round_up(A3, 8) * ndl * 4              # f32 intermediate
    if mode == "single":
        per += 2 * ndl * x_isz + 2 * _round_up(A3, 128) * o_isz
    elif mode == "vpu_multi":
        per += 2 * _round_up(NO, 8) * ndl * x_isz
        per += 2 * _round_up(NO, 8) * _round_up(A3, 128) * o_isz
    else:
        per += 2 * _round_up(ND, 8) * _round_up(NO, 128) * x_isz
        per += 2 * _round_up(A3, 8) * _round_up(NO, 128) * o_isz
    cap = max(1, budget // per)
    cap = min(cap, 64, B)                          # 64 caps the unrolled DMA count / step
    if mode == "single":
        if B < 8:
            return B
        return max(8, (cap // 8) * 8)
    return max(1, cap)


# ---------------------------------------------------------------------------
# Wrapper
# ---------------------------------------------------------------------------

def smart_derivatives_forward(d_mat, meta, x, ref_idx=None, *,
                              vmem_budget_bytes=None, max_tk=None,
                              mxu_dot_dtype=jnp.bfloat16):
    """Forward pass.

    d_mat   : (N, A3 = n_atoms*3, n_desc) pre-laid-out left matrix (from setup)
    x       : (B, n_desc) or (B, n_desc, n_out)
    ref_idx : optional (B,) int32 indices into the pristine dataset rows of d_mat
    mxu_dot_dtype : operand dtype for the large-n_out MXU contraction; jnp.float32
                    selects the full-precision (multi-pass) MXU path.
    returns : (B, n_atoms, 3) or (B, n_atoms, 3, n_out)
    """
    n_atoms, n_dim, n_desc = meta
    N, A3, nd2 = d_mat.shape
    assert A3 == n_atoms * n_dim and nd2 == n_desc

    squeeze_out = (x.ndim == 2)
    if squeeze_out:
        B, nd_x = x.shape
        NO = 1
    else:
        B, nd_x, NO = x.shape
    assert nd_x == n_desc

    hw = _hw_params()
    budget = int(vmem_budget_bytes) if vmem_budget_bytes is not None else hw["budget"]
    vmem_limit = hw["vmem_limit"]
    min_steps = hw["min_grid_steps"]

    out_dtype = x.dtype
    d_isz = jnp.dtype(d_mat.dtype).itemsize
    x_isz = jnp.dtype(x.dtype).itemsize
    o_isz = jnp.dtype(out_dtype).itemsize

    # ---- mode selection -----------------------------------------------------
    if NO == 1:
        mode = "single"
        x_in = x if squeeze_out else x[:, :, 0]
    else:
        # MXU only when its K (n_desc) / M (A3) dims are reasonably utilized and n_out
        # is large enough that the VPU loop would re-stream d too many times.
        use_mxu = (NO >= 16 and n_desc >= 128 and A3 >= 16) or NO >= 64
        if use_mxu:
            mode = "mxu"
            x_in = x                               # (B, ND, NO): no wrapper transpose
        else:
            mode = "vpu_multi"
            x_in = jnp.transpose(x, (0, 2, 1))     # (B, NO, ND): NO on sublanes

    def _cparams(dims):
        kw = {"dimension_semantics": dims}
        if vmem_limit is not None:
            kw["vmem_limit_bytes"] = int(vmem_limit)
        return pltpu.CompilerParams(**kw)

    if ref_idx is None:
        # ---- contiguous path: rows 0..B-1 of the pre-laid-out left matrix ----
        assert B <= N
        TB, TK = _plan_contiguous(B, A3, n_desc, NO, mode, d_isz, x_isz, o_isz,
                                  budget, min_steps, max_tk)
        nb, nk = _cdiv(B, TB), _cdiv(n_desc, TK)

        # NOTE: on v5e/v6e a third buffer (pipeline_mode=pl.Buffered(3)) on d_spec can
        # hide DMA issue jitter if the bundle dump shows exposed DMA; not enabled here.
        d_spec = pl.BlockSpec((TB, A3, TK), lambda i, k: (i, 0, k))
        if mode == "single":
            x_spec = pl.BlockSpec((TB, TK), lambda i, k: (i, k))
            out_spec = pl.BlockSpec((TB, A3), lambda i, k: (i, 0))
            out_shape2 = (B, A3)
            acc_shape = (TB, A3)
        elif mode == "vpu_multi":
            x_spec = pl.BlockSpec((TB, NO, TK), lambda i, k: (i, 0, k))
            out_spec = pl.BlockSpec((TB, NO, A3), lambda i, k: (i, 0, 0))
            out_shape2 = (B, NO, A3)
            acc_shape = (TB, NO, A3)
        else:
            x_spec = pl.BlockSpec((TB, TK, NO), lambda i, k: (i, k, 0))
            out_spec = pl.BlockSpec((TB, A3, NO), lambda i, k: (i, 0, 0))
            out_shape2 = (B, A3, NO)
            acc_shape = (TB, A3, NO)

        out = pl.pallas_call(
            _make_contig_kernel(mode, TK, n_desc, mxu_dot_dtype),
            out_shape=jax.ShapeDtypeStruct(out_shape2, out_dtype),
            grid=(nb, nk),
            in_specs=[d_spec, x_spec],
            out_specs=out_spec,
            scratch_shapes=[pltpu.VMEM(acc_shape, jnp.float32)],
            compiler_params=_cparams(("parallel", "arbitrary")),
        )(d_mat, x_in)
    else:
        # ---- manual-gather path: TB samples per step, double-buffered DMA --------
        # TODO(synk): torch's -1 markers for excluded boundary samples are not
        #             supported; they are clamped to row 0 (pass variational indices).
        # TODO(synk): very large per-sample planes (A3 * n_desc) would benefit from a
        #             K-tiled manual gather; here each sample's full plane is buffered.
        ref_idx = jnp.clip(ref_idx.astype(jnp.int32), 0, N - 1)
        TB = _plan_gather(B, A3, n_desc, NO, mode, d_isz, x_isz, o_isz, budget)
        nsteps = _cdiv(B, TB)
        pad = nsteps * TB - B
        if pad:
            ref_idx = jnp.concatenate([ref_idx, jnp.zeros((pad,), jnp.int32)])

        d_spec = pl.BlockSpec(memory_space=pl.ANY)
        if mode == "single":
            x_spec = pl.BlockSpec((TB, n_desc), lambda i, ref: (i, 0))
            out_spec = pl.BlockSpec((TB, A3), lambda i, ref: (i, 0))
            out_shape2 = (B, A3)
        elif mode == "vpu_multi":
            x_spec = pl.BlockSpec((TB, NO, n_desc), lambda i, ref: (i, 0, 0))
            out_spec = pl.BlockSpec((TB, NO, A3), lambda i, ref: (i, 0, 0))
            out_shape2 = (B, NO, A3)
        else:
            x_spec = pl.BlockSpec((TB, n_desc, NO), lambda i, ref: (i, 0, 0))
            out_spec = pl.BlockSpec((TB, A3, NO), lambda i, ref: (i, 0, 0))
            out_shape2 = (B, A3, NO)

        grid_spec = pltpu.PrefetchScalarGridSpec(
            num_scalar_prefetch=1,
            grid=(nsteps,),
            in_specs=[d_spec, x_spec],
            out_specs=out_spec,
            scratch_shapes=[pltpu.VMEM((2, TB, A3, n_desc), d_mat.dtype),
                            pltpu.SemaphoreType.DMA((2, TB))],
        )
        out = pl.pallas_call(
            _make_gather_kernel(mode, TB, mxu_dot_dtype),
            out_shape=jax.ShapeDtypeStruct(out_shape2, out_dtype),
            grid_spec=grid_spec,
            # manual double-buffer carries state across steps -> sequential grid
            compiler_params=_cparams(("arbitrary",)),
        )(ref_idx, d_mat, x_in)

    if mode == "single":
        out = out.reshape(B, n_atoms, n_dim)
        if not squeeze_out:
            out = out[..., None]
    elif mode == "vpu_multi":
        out = jnp.transpose(out, (0, 2, 1)).reshape(B, n_atoms, n_dim, NO)
    else:
        out = out.reshape(B, n_atoms, n_dim, NO)
    return out


class SmartDerivativesTPU:
    """Pallas-TPU analogue of mlcolvar SmartDerivatives (forward pass only)."""

    def __init__(self, d_desc_d_pos, left_dtype=jnp.float32):
        # One-time setup (analogue of _setup_left): lay out the fixed left matrix as
        # (N, n_atoms*3, n_desc) so the forward hot path never pays a strided transpose.
        # left_dtype=jnp.bfloat16 halves the dominant HBM stream (validate numerics).
        N, n_atoms, n_desc, n_dim = d_desc_d_pos.shape
        self.meta = (n_atoms, n_dim, n_desc)
        d = jnp.transpose(d_desc_d_pos, (0, 1, 3, 2)).reshape(
            N, n_atoms * n_dim, n_desc)
        self.d_mat = d.astype(left_dtype)
        # TODO(synk): for very small (A3, n_desc) planes, a flattened 128-aligned lane
        #             repack of d_mat would cut the (8,128) padding read amplification.

    def __call__(self, x, ref_idx=None, **kwargs):
        return smart_derivatives_forward(self.d_mat, self.meta, x,
                                         ref_idx=ref_idx, **kwargs)


if __name__ == "__main__":
    key = jax.random.PRNGKey(0)
    k_pos, k_x, k_idx, k_x2, k_d4, k_x4 = jax.random.split(key, 6)

    # Small deterministic synthetic setup consistent with the module:
    # N samples, n_atoms atoms, descriptors = all pairwise distances.
    N, n_atoms = 16, 10
    pos = jax.random.normal(k_pos, (N, n_atoms, 3), dtype=jnp.float32)

    iu, ju = jnp.triu_indices(n_atoms, k=1)
    n_desc = int(iu.shape[0])                      # 45

    def descriptor_fn(p):                          # (n_atoms, 3) -> (n_desc,)
        diff = p[iu] - p[ju]
        return jnp.sqrt(jnp.sum(diff * diff, axis=-1) + 1e-12)

    # Setup phase (plain JAX autodiff replaces the torch.autograd.grad loop).
    jac = jax.vmap(jax.jacrev(descriptor_fn))(pos)     # (N, n_desc, n_atoms, 3)
    d_desc_d_pos = jnp.transpose(jac, (0, 2, 1, 3))    # (N, n_atoms, n_desc, 3)

    sd = SmartDerivativesTPU(d_desc_d_pos)

    # ---- case 1: contiguous, n_out == 1 (VPU mul + lane reduce, K accumulator) ----
    x1 = jax.random.normal(k_x, (N, n_desc), dtype=jnp.float32)
    out1 = jax.block_until_ready(sd(x1))
    ref1 = jnp.sum(d_desc_d_pos * x1[:, None, :, None], axis=2)
    assert out1.shape == (N, n_atoms, 3)
    assert out1.dtype == jnp.float32
    assert jnp.allclose(out1, ref1, atol=1e-4, rtol=1e-4)

    # ---- case 2: ref_idx gather (manual double-buffered DMA, multi-sample steps,
    #              padded tail step) ----
    B2 = 12
    ref_idx = jax.random.permutation(k_idx, N)[:B2].astype(jnp.int32)
    x2 = jax.random.normal(k_x2, (B2, n_desc), dtype=jnp.float32)
    out2 = jax.block_until_ready(sd(x2, ref_idx=ref_idx))
    ref2 = jnp.sum(d_desc_d_pos[ref_idx] * x2[:, None, :, None], axis=2)
    assert out2.shape == (B2, n_atoms, 3)
    assert jnp.allclose(out2, ref2, atol=1e-4, rtol=1e-4)

    # ---- case 3: small n_out (VPU multi-output path), contiguous ----
    n_out3 = 4
    x3 = jax.random.normal(jax.random.PRNGKey(3), (N, n_desc, n_out3), dtype=jnp.float32)
    out3 = jax.block_until_ready(sd(x3))
    ref3 = jnp.sum(d_desc_d_pos[:, :, :, :, None] * x3[:, None, :, None, :], axis=2)
    assert out3.shape == (N, n_atoms, 3, n_out3)
    assert jnp.allclose(out3, ref3, atol=1e-4, rtol=1e-4)

    # ---- case 4: MXU path (large n_out, lane-dense output, no wrapper transposes)
    #              + descriptor K-tiling with a non-dividing tile (remainder masking) ----
    N4, na4, nd4, no4 = 8, 16, 200, 32
    d4 = jax.random.normal(k_d4, (N4, na4, nd4, 3), dtype=jnp.float32)
    x4 = jax.random.normal(k_x4, (N4, nd4, no4), dtype=jnp.float32)
    sd4 = SmartDerivativesTPU(d4)
    out4 = jax.block_until_ready(sd4(x4, vmem_budget_bytes=2 << 20, max_tk=128))
    d4_bf = d4.astype(jnp.bfloat16).astype(jnp.float32)
    x4_bf = x4.astype(jnp.bfloat16).astype(jnp.float32)
    ref4 = jnp.einsum("badk,bdo->bako", d4_bf, x4_bf,
                      precision=lax.Precision.HIGHEST)
    assert out4.shape == (N4, na4, 3, no4)
    assert jnp.allclose(out4, ref4, atol=1e-3, rtol=1e-3)

    # ---- case 5: bf16 storage of the fixed left matrix (halves the d_mat HBM stream) ----
    sd_bf16 = SmartDerivativesTPU(d_desc_d_pos, left_dtype=jnp.bfloat16)
    out5 = jax.block_until_ready(sd_bf16(x1))
    d_bf = d_desc_d_pos.astype(jnp.bfloat16).astype(jnp.float32)
    ref5 = jnp.sum(d_bf * x1[:, None, :, None], axis=2)
    assert jnp.allclose(out5, ref5, atol=1e-4, rtol=1e-4)

    print("KERNEL_OK")
</pallas_src>

<mosaic_0001>
module attributes {stable_mosaic.version = 11 : i64} {
  func.func @kernel(%arg0: i32, %arg1: i32, %arg2: memref<8x30x45xf32, #tpu.memory_space<vmem>>, %arg3: memref<8x45xf32, #tpu.memory_space<vmem>>, %arg4: memref<8x30xf32, #tpu.memory_space<vmem>>, %arg5: memref<8x30xf32, #tpu.memory_space<vmem>>) attributes {dimension_semantics = [#tpu.dimension_semantics<parallel>, #tpu.dimension_semantics<arbitrary>], iteration_bounds = array<i64: 2, 1>, scalar_prefetch = 0 : i64, scratch_operands = 1 : i64, tpu.core_type = #tpu.core_type<tc>, window_params = [{transform_indices = @transform_0, window_bounds = array<i64: 8, 30, 45>}, {transform_indices = @transform_1, window_bounds = array<i64: 8, 45>}, {transform_indices = @transform_2, window_bounds = array<i64: 8, 30>}]} {
    %c0_i32 = arith.constant 0 : i32
    %0 = arith.cmpi eq, %arg1, %c0_i32 : i32
    %1 = arith.extui %0 : i1 to i32
    %c0_i32_0 = arith.constant 0 : i32
    %2 = arith.cmpi ne, %1, %c0_i32_0 : i32
    scf.if %2 {
      %cst_11 = arith.constant 0.000000e+00 : f32
      %15 = vector.broadcast %cst_11 : f32 to vector<8x30xf32>
      %c0_12 = arith.constant 0 : index
      %c0_13 = arith.constant 0 : index
      %16 = vector.load %arg5[%c0_12, %c0_13] : memref<8x30xf32, #tpu.memory_space<vmem>>, vector<8x30xf32>
      tpu.vector_store %arg5[%c0_12, %c0_13], %15 {strides = array<i32>} : memref<8x30xf32, #tpu.memory_space<vmem>>, vector<8x30xf32>,
    } else {
    }
    %c0 = arith.constant 0 : index
    %c0_1 = arith.constant 0 : index
    %c0_2 = arith.constant 0 : index
    %3 = vector.load %arg2[%c0, %c0_1, %c0_2] : memref<8x30x45xf32, #tpu.memory_space<vmem>>, vector<8x30x45xf32>
    %c0_3 = arith.constant 0 : index
    %c0_4 = arith.constant 0 : index
    %4 = vector.load %arg3[%c0_3, %c0_4] : memref<8x45xf32, #tpu.memory_space<vmem>>, vector<8x45xf32>
    %5 = vector.shape_cast %4 : vector<8x45xf32> to vector<8x1x45xf32>
    %6 = vector.broadcast %5 : vector<8x1x45xf32> to vector<8x30x45xf32>
    %7 = arith.mulf %3, %6 : vector<8x30x45xf32>
    %c0_5 = arith.constant 0 : index
    %c0_6 = arith.constant 0 : index
    %8 = vector.load %arg5[%c0_5, %c0_6] : memref<8x30xf32, #tpu.memory_space<vmem>>, vector<8x30xf32>
    %cst = arith.constant dense<0.000000e+00> : vector<8x30xf32>
    %9 = vector.multi_reduction <add>, %7, %cst [2] : vector<8x30x45xf32> to vector<8x30xf32>
    %10 = arith.addf %8, %9 : vector<8x30xf32>
    %c0_7 = arith.constant 0 : index
    %c0_8 = arith.constant 0 : index
    %11 = vector.load %arg5[%c0_7, %c0_8] : memref<8x30xf32, #tpu.memory_space<vmem>>, vector<8x30xf32>
    tpu.vector_store %arg5[%c0_7, %c0_8], %10 {strides = array<i32>} : memref<8x30xf32, #tpu.memory_space<vmem>>, vector<8x30xf32>,
    %c0_i32_9 = arith.constant 0 : i32
    %12 = arith.cmpi eq, %arg1, %c0_i32_9 : i32
    %13 = arith.extui %12 : i1 to i32
    %c0_i32_10 = arith.constant 0 : i32
    %14 = arith.cmpi ne, %13, %c0_i32_10 : i32
    scf.if %14 {
      %c0_11 = arith.constant 0 : index
      %c0_12 = arith.constant 0 : index
      %15 = vector.load %arg5[%c0_11, %c0_12] : memref<8x30xf32, #tpu.memory_space<vmem>>, vector<8x30xf32>
      %c0_13 = arith.constant 0 : index
      %c0_14 = arith.constant 0 : index
      %16 = vector.load %arg4[%c0_13, %c0_14] : memref<8x30xf32, #tpu.memory_space<vmem>>, vector<8x30xf32>
      tpu.vector_store %arg4[%c0_13, %c0_14], %15 {strides = array<i32>} : memref<8x30xf32, #tpu.memory_space<vmem>>, vector<8x30xf32>,
    } else {
    }
    return
  }
  func.func @transform_0(%arg0: i32, %arg1: i32) -> (i32, i32, i32) {
    %c0_i32 = arith.constant 0 : i32
    %c0_i32_0 = arith.constant 0 : i32
    return %arg0, %c0_i32, %arg1 : i32, i32, i32
  }
  func.func @transform_1(%arg0: i32, %arg1: i32) -> (i32, i32) {
    %c0_i32 = arith.constant 0 : i32
    return %arg0, %arg1 : i32, i32
  }
  func.func @transform_2(%arg0: i32, %arg1: i32) -> (i32, i32) {
    %c0_i32 = arith.constant 0 : i32
    %c0_i32_0 = arith.constant 0 : i32
    return %arg0, %c0_i32 : i32, i32
  }
}

</mosaic_0001>

<bundles_post_ra>
// kernel: tpu_custom_call.1
= control target key start
LH: loop header
LB: loop body
LE: loop exit
PB: predicated region body
PF: predicated region fallthrough
CT: control target
= control target key end

     0   :  { %7 = vsyncpa [#allocation4], 0  ;;  %s1227_s0 = inlined_call_operand.vmem [shape: f32[16,30,45], index: 0, kind: input, shape index: {}]   ;;  %s1228_s1 = inlined_call_operand.vmem [shape: f32[16,45], index: 1, kind: input, shape index: {}]   ;;  %s1229_s2 = inlined_call_operand.hbm [shape: f32[16,30], index: 2, kind: output, shape index: {}]  }
   0x1   :  { %9 = vsyncpa [#allocation4 + $0x1], 0  ;;  %s946_s9 = smov 0   ;;  %s948_s10 = smov 0  }
   0x2   :  { %s950_s11 = smov 0   ;;  %s952_s12 = smov 0  }
   0x3   :  { %s954_s13 = smov 0   ;;  %s956_s14 = smov 0  }
   0x4 LB: > { %s775_s15 = sadd.s32 4294967295, %s926_s14   ;;  %s776_s16 = sadd.s32 4294967294, %s926_s14   ;;  %s926_s14 = sphi %s956_s14, %s15_s14   ;;  %s922_s13 = sphi %s954_s13, %s1236_s13   ;;  %s918_s12 = sphi %s952_s12, %s1235_s12   ;;  %s914_s11 = sphi %s950_s11, %s1234_s11   ;;  %s910_s10 = sphi %s948_s10, %s1233_s10   ;;  %s906_s9 = sphi %s946_s9, %s1232_s9  }
   0x5   : > { %s27_s17 = sadd.s32 1, %s922_s13  ;;  %s90_s18 = sadd.s32 1, %s914_s11 }
   0x6   : > { %p29_p0 = scmp.ge.s32.totalorder %s27_s17, 2  ;;  %p100_p1 = scmp.ne.s32.totalorder %s914_s11, %s910_s10 }
   0x7   : > { %p101_p2 = scmp.eq.s32.totalorder %s775_s15, 1  ;;  %p106_p3 = scmp.ne.s32.totalorder %s910_s10, %s906_s9 }
   0x8   : > { %s1238_s17 = smov (%p29_p0, %s27_s17), 0  ;;  %p107_p5 = scmp.eq.s32.totalorder %s776_s16, 1 }
   0x9   : > { %p986_p4 = por %p101_p2, %p100_p1  ;;  %s87_s20 = ssub.s32 %s922_s13, %s1238_s17 }
   0xa   : > { %p779_p6 = scmp.ge.s32.totalorder %s926_s14, 1  ;;  %p88_p7 = scmp.eq.s32.totalorder %s87_s20, 0 }
   0xb   : > { %p993_p8 = por %p107_p5, %p106_p3  ;;  %p148_p9 = scmp.lt.s32.totalorder %s926_s14, 3 }
   0xc   : > { %s999_s22 = scalar_select %p88_p7, %s914_s11, %s90_s18  }
   0xd   : > { %p149_p10 = pnand %p779_p6, %p148_p9 }
   0xe   : > { %s781_s23 = sshll.u32 (!%p149_p10), %s918_s12, 3  ;;  %p191_p11 = scmp.lt.s32.totalorder (!%p149_p10), %s918_s12, 1  ;;  %v242_v0 = vlaneseq (!%p149_p10)  ;;  %v928_v1 = vmov (!%p149_p10), 1966171168   ;;  %vm360_vm0 = vcmask (!%p149_p10), 367616   ;;  %vm370_vm1 = vcmask (!%p149_p10), 365568  }
   0xf   : > { %152 = sbr.rel (%p149_p10) target bundleno = 268 (0x10c), region = 28  ;;  %p182_p12 = scmp.lt.s32.totalorder (!%p149_p10), %s781_s23, 15  ;;  %v240_v2 = vunpack.c.l.s4 (!%p149_p10), %v928_v1  ;;  %vm202_vm2 = vcmask (!%p149_p10), 244736   ;;  %vm501_vm3 = vcmask (!%p149_p10), 130112   ;;  %vm508_vm4 = vcmask (!%p149_p10), 195712  }
  0x10   : > { %v1004_v3 = vshrl.u32 (!%p149_p10), %v242_v0, 7  ;;  %v1006_v4 = vand.u32 (!%p149_p10), 127, %v242_v0  ;;  %vm515_vm5 = vcmask (!%p149_p10), 261312   ;;  %vm650_vm6 = vcmask (!%p149_p10), 1041409   ;;  %s178_s5 = sand.u32 (!%p149_p10), 1, %s910_s10   ;;  %s786_s7 = sshll.u32 (!%p149_p10), %s918_s12, 7 }
  0x11   : > { %v241_v5 = vunpack.c.0.s8 (!%p149_p10), %v240_v2  ;;  %vm652_vm7 = vcmask (!%p149_p10), 1042434   ;;  %vm654_vm8 = vcmask (!%p149_p10), 1043459   ;;  %vm656_vm9 = vcmask (!%p149_p10), 1044484   ;;  %s780_s6 = sshll.u32 (!%p149_p10), %s178_s5, 3  ;;  %s1179_s20 = scalar_lea.hbm (!%p149_p10), %s1229_s2, %s786_s7 }
  0x12   : > { %v1010_v6 = vsub.s32 (!%p149_p10), %v1006_v4, %v1004_v3  ;;  %v1025_v10 = vsub.s32 (!%p149_p10), 0, %v1004_v3  ;;  %v496_v59 = vadd.s32 (!%p149_p10), 4294967288, %v1006_v4  ;;  %v503_v0 = vadd.s32 (!%p149_p10), 4294967280, %v1006_v4  ;;  %s180_s8 = scalar_lea.vmem (!%p149_p10), [#allocation3], %s780_s6 }
  0x13   : > { %v1016_v7 = vsub.s32 (!%p149_p10), %v241_v5, %v1004_v3  ;;  %vm658_vm10 = vcmask (!%p149_p10), 1045509   ;;  %vm660_vm11 = vcmask (!%p149_p10), 1046534   ;;  %vm662_vm12 = vcmask (!%p149_p10), 1047559   ;;  %s687_s15 = sshll.u32 (!%p149_p10), %s180_s8, 4  ;;  %s1181_s15 = int_to_ptr.vmem [resolvable:$true] %s687_s15 }
  0x14   : > { %v1063_v63 = vsub.s32 (!%p149_p10), %v496_v59, %v1004_v3 }
  0x16   : > { %s192_s24 = scalar_select %p191_p11, %s918_s12, 1 }
  0x17   : > { %s1240_s23 = smov (!%p182_p12, %s781_s23), 15  ;;  %s930_s12 = smov [#allocation3]  }
  0x18   : > { %s784_s25 = sshll.u32 %s192_s24, 3  ;;  %s789_s26 = sshll.u32 %s1240_s23, 5 }
  0x19   : > { %s197_s29 = scalar_lea.vmem %s1228_s1, %s784_s25  ;;  %s1021_s4 = scalar_lea.vmem %s1227_s0, %s789_s26 }
  0x1a   : > { %v236_v8 = vld [vmem:[%s197_s29] sm:$0xff]  ;;  %v205_v14 = vld [vmem:[%s1021_s4 + $0x8] sm:$0xff]  ;;  %v206_v22 = vld [vmem:[%s1021_s4 + $0x10] sm:$0xff]  ;;  %s674_s23 = scalar_lea.sflag [#allocation4], %s178_s5  ;;  %s848_s24 = scalar_lea.vmem %s1181_s15, 128 }
  0x1b   : > { %v245_v9 = vrot.slane %v236_v8, %v1016_v7  ;;  %v204_v13 = vld [vmem:[%s1021_s4] sm:$0xff]  ;;  %v209_v18 = vld [vmem:[%s1021_s4 + $0x28] sm:$0xff]  ;;  %v210_v27 = vld [vmem:[%s1021_s4 + $0x30] sm:$0xff]  ;;  %v238_v39 = vcombine.high %v236_v8, %v236_v8  ;;  %p849_p13 = scmp.ne.s32.totalorder %s1181_s15, %s848_s24  ;;  %s852_s25 = sshll.u32 %s930_s12, 4  ;;  %s853_s25 = int_to_ptr.vmem [resolvable:$false] %s852_s25 }
  0x1c   : > { %v208_v17 = vld [vmem:[%s1021_s4 + $0x20] sm:$0xff]  ;;  %v207_v31 = vld [vmem:[%s1021_s4 + $0x18] sm:$0x3f]  ;;  %v213_v35 = vld [vmem:[%s1021_s4 + $0x48] sm:$0xff]  ;;  %s854_s26 = scalar_lea.vmem %s853_s25, 256  ;;  %p855_p2 = scmp.lt.s32.totalorder %s1181_s15, %s853_s25 }
  0x1d   : > { %v261_v11 = vrot.slane %v245_v9, %v1016_v7  ;;  %v253_v12 = vcombine.high %v245_v9, %v245_v9  ;;  %v212_v38 = vld [vmem:[%s1021_s4 + $0x40] sm:$0xff]  ;;  %v211_v43 = vld [vmem:[%s1021_s4 + $0x38] sm:$0x3f]  ;;  %v214_v46 = vld [vmem:[%s1021_s4 + $0x50] sm:$0xff]  ;;  %v252_v50 = vrot.slane %v238_v39, %v1016_v7  ;;  %p850_p0 = pnand %p849_p13, %p986_p4  ;;  %p856_p3 = scmp.lt.s32.totalorder %s854_s26, %s848_s24 }
  0x1e   : > { %v216_v51 = vld [vmem:[%s1021_s4 + $0x60] sm:$0xff]  ;;  %v217_v54 = vld [vmem:[%s1021_s4 + $0x68] sm:$0xff]  ;;  %v215_v58 = vld [vmem:[%s1021_s4 + $0x58] sm:$0x3f] }
  0x1f   : > { %v290_v15 = vrot.slane %v261_v11, %v1025_v10  ;;  %v275_v16 = vrot.slane %v253_v12, %v1016_v7  ;;  %v283_v26 = vcombine.high %v261_v11, %v261_v11  ;;  %v268_v57 = vrot.slane %v252_v50, %v1016_v7  ;;  %v218_v62 = vld [vmem:[%s1021_s4 + $0x70] sm:$0xff]  ;;  %v220_v9 = vld [vmem:[%s1021_s4 + $0x80] sm:$0xff]  ;;  %p851_p1 = pneg %p850_p0  ;;  %p857_p5 = por %p856_p3, %p855_p2 }
  0x20   : > { %v254_v8 = vcombine.high %v252_v50, %v252_v50  ;;  %v1070_v11 = vsub.s32 %v503_v0, %v1004_v3  ;;  %v235_v0 = vld [vmem:[%s1021_s4 + $0xf8] sm:$0x3f] }
  0x21   : > { %v327_v19 = vmul.f32 %v290_v15, %v204_v13  ;;  %v294_v20 = vrot.slane %v275_v16, %v1025_v10  ;;  %v328_v21 = vmul.f32 %v290_v15, %v205_v14  ;;  %v329_v30 = vmul.f32 %v290_v15, %v206_v22  ;;  %v221_v14 = vld [vmem:[%s1021_s4 + $0x88] sm:$0xff]  ;;  %p858_p6 = pnand %p857_p5, %p851_p1 }
  0x22   : > { %v298_v34 = vrot.slane %v283_v26, %v1025_v10  ;;  %v330_v37 = vmul.f32 %v290_v15, %v207_v31  ;;  %v285_v42 = vcombine.high %v275_v16, %v275_v16  ;;  %v306_v5 = vrot.slane %v268_v57, %v1025_v10  ;;  %v223_v31 = vld [vmem:[%s1021_s4 + $0x98] sm:$0x3f] }
  0x23   : > { %v361_v23 = vsel %vm360_vm0, %v327_v19, 0.0  ;;  %v331_v24 = vmul.f32 %v294_v20, %v208_v17  ;;  %v332_v25 = vmul.f32 %v294_v20, %v209_v18  ;;  %v364_v29 = vsel %vm360_vm0, %v328_v21, 0.0  ;;  %v219_v19 = vld [vmem:[%s1021_s4 + $0x78] sm:$0x3f] }
  0x24   : > { %362 = vadd.xlane.f32.xlu0 %v361_v23  ;;  %v333_v33 = vmul.f32 %v294_v20, %v210_v27  ;;  %v367_v36 = vsel %vm360_vm0, %v329_v30, 0.0  ;;  %v336_v41 = vmul.f32 %v298_v34, %v213_v35  ;;  %v371_v44 = vsel %vm370_vm1, %v330_v37, 0.0  ;;  %v222_v23 = vld [vmem:[%s1021_s4 + $0x90] sm:$0xff] }
  0x25   : > { %v374_v28 = vsel %vm360_vm0, %v331_v24, 0.0  ;;  %v377_v32 = vsel %vm360_vm0, %v332_v25, 0.0  ;;  %v335_v45 = vmul.f32 %v298_v34, %v212_v38  ;;  %v334_v48 = vmul.f32 %v294_v20, %v211_v43  ;;  %v228_v38 = vld [vmem:[%s1021_s4 + $0xc0] sm:$0xff] }
  0x26   : > { %375 = vadd.xlane.f32.xlu1 %v374_v28  ;;  %v380_v40 = vsel %vm360_vm0, %v333_v33, 0.0  ;;  %v389_v47 = vsel %vm360_vm0, %v336_v41, 0.0  ;;  %v302_v49 = vrot.slane %v285_v42, %v1025_v10  ;;  %v337_v53 = vmul.f32 %v298_v34, %v214_v46  ;;  %v229_v41 = vld [vmem:[%s1021_s4 + $0xc8] sm:$0xff] }
  0x27   : > { %v386_v52 = vsel %vm360_vm0, %v335_v45, 0.0  ;;  %v383_v55 = vsel %vm370_vm1, %v334_v48, 0.0  ;;  %v338_v2 = vmul.f32 %v298_v34, %v215_v58  ;;  %v510_v15 = vadd.s32 4294967272, %v1006_v4  ;;  %v226_v34 = vld [vmem:[%s1021_s4 + $0xb0] sm:$0xff]  ;;  %v227_v45 = vld [vmem:[%s1021_s4 + $0xb8] sm:$0x3f] }
  0x28   : > { %365 = vadd.xlane.f32.xlu0 %v364_v29  ;;  %v339_v56 = vmul.f32 %v302_v49, %v216_v51  ;;  %v392_v60 = vsel %vm360_vm0, %v337_v53, 0.0  ;;  %v340_v61 = vmul.f32 %v302_v49, %v217_v54  ;;  %v341_v13 = vmul.f32 %v302_v49, %v218_v62  ;;  %v230_v48 = vld [vmem:[%s1021_s4 + $0xd0] sm:$0xff]  ;;  %v231_v58 = vld [vmem:[%s1021_s4 + $0xd8] sm:$0x3f] }
  0x29   : > { %v395_v16 = vsel %vm370_vm1, %v338_v2, 0.0  ;;  %v343_v17 = vmul.f32 %v306_v5, %v220_v9  ;;  %v282_v18 = vrot.slane %v254_v8, %v1016_v7  ;;  %v1079_v20 = vsub.s32 %v510_v15, %v1004_v3  ;;  %v224_v7 = vld [vmem:[%s1021_s4 + $0xa0] sm:$0xff]  ;;  %v225_v3 = vld [vmem:[%s1021_s4 + $0xa8] sm:$0xff] }
  0x2a   : > { %378 = vadd.xlane.f32.xlu1 %v377_v32  ;;  %v398_v1 = vsel %vm360_vm0, %v339_v56, 0.0  ;;  %v401_v12 = vsel %vm360_vm0, %v340_v61, 0.0  ;;  %v404_v21 = vsel %vm360_vm0, %v341_v13, 0.0  ;;  %v344_v22 = vmul.f32 %v306_v5, %v221_v14  ;;  %v234_v61 = vld [vmem:[%s1021_s4 + $0xf0] sm:$0xff] }
  0x2b   : > { %v410_v24 = vsel %vm360_vm0, %v343_v17, 0.0  ;;  %v342_v4 = vmul.f32 %v302_v49, %v219_v19  ;;  %v310_v25 = vrot.slane %v282_v18, %v1025_v10  ;;  %v345_v27 = vmul.f32 %v306_v5, %v222_v23 }
  0x2c   : > { %368 = vadd.xlane.f32.xlu0 %v367_v36  ;;  %v413_v26 = vsel %vm360_vm0, %v344_v22, 0.0  ;;  %v284_v30 = vcombine.high %v268_v57, %v268_v57  ;;  %v346_v36 = vmul.f32 %v306_v5, %v223_v31  ;;  %v929_v13 = vmov 0.0  }
  0x2d   : > { %v407_v28 = vsel %vm370_vm1, %v342_v4, 0.0  ;;  %v347_v29 = vmul.f32 %v310_v25, %v224_v7  ;;  %v416_v32 = vsel %vm360_vm0, %v345_v27, 0.0  ;;  %v348_v33 = vmul.f32 %v310_v25, %v225_v3  ;;  %203 = vst.msk [vmem:[#allocation2] sm:$0xff] %vm202_vm2, %v929_v13 }
  0x2e   : > { %381 = vadd.xlane.f32.xlu1 %v380_v40  ;;  %v314_v37 = vrot.slane %v284_v30, %v1025_v10  ;;  %v349_v40 = vmul.f32 %v310_v25, %v226_v34  ;;  %v419_v42 = vsel %vm370_vm1, %v346_v36, 0.0  ;;  %v350_v50 = vmul.f32 %v310_v25, %v227_v45 }
  0x2f   : > { %v422_v35 = vsel %vm360_vm0, %v347_v29, 0.0  ;;  %v425_v39 = vsel %vm360_vm0, %v348_v33, 0.0 }
  0x30   : > { %372 = vadd.xlane.f32.xlu0 %v371_v44  ;;  %v351_v43 = vmul.f32 %v314_v37, %v228_v38  ;;  %v286_v44 = vcombine.high %v282_v18, %v282_v18  ;;  %v428_v46 = vsel %vm360_vm0, %v349_v40, 0.0  ;;  %v353_v54 = vmul.f32 %v314_v37, %v230_v48 }
  0x31   : > { %v431_v56 = vsel %vm370_vm1, %v350_v50, 0.0  ;;  %v354_v62 = vmul.f32 %v314_v37, %v231_v58 }
  0x32   : > { %390 = vadd.xlane.f32.xlu1 %v389_v47  ;;  %v352_v47 = vmul.f32 %v314_v37, %v229_v41  ;;  %v434_v49 = vsel %vm360_vm0, %v351_v43, 0.0  ;;  %v318_v51 = vrot.slane %v286_v44, %v1025_v10  ;;  %v440_v59 = vsel %vm360_vm0, %v353_v54, 0.0 }
  0x33   : > { %v443_v5 = vsel %vm370_vm1, %v354_v62, 0.0 }
  0x34   : > { %387 = vadd.xlane.f32.xlu0 %v386_v52  ;;  %v232_v52 = vld [vmem:[%s1021_s4 + $0xe0] sm:$0xff]  ;;  %v437_v53 = vsel %vm360_vm0, %v352_v47, 0.0  ;;  %v357_v2 = vmul.f32 %v318_v51, %v234_v61  ;;  %v358_v8 = vmul.f32 %v318_v51, %v235_v0 }
  0x35   : > { %v355_v57 = vmul.f32 %v318_v51, %v232_v52 }
  0x36   : > { %384 = vadd.xlane.f32.xlu1 %v383_v55  ;;  %v233_v55 = vld [vmem:[%s1021_s4 + $0xe8] sm:$0xff]  ;;  %v452_v9 = vsel %vm360_vm0, %v357_v2, 0.0 }
  0x37   : > { %v446_v10 = vsel %vm360_vm0, %v355_v57, 0.0 }
  0x38   : > { %393 = vadd.xlane.f32.xlu0 %v392_v60  ;;  %v356_v60 = vmul.f32 %v318_v51, %v233_v55 }
  0x3a   : > { %399 = vadd.xlane.f32.xlu1 %v398_v1  ;;  %v449_v1 = vsel %vm360_vm0, %v356_v60, 0.0 }
  0x3c   : > { %402 = vadd.xlane.f32.xlu0 %v401_v12  ;;  %v455_v12 = vsel %vm370_vm1, %v358_v8, 0.0 }
  0x3e   : > { %396 = vadd.xlane.f32.xlu1 %v395_v16 }
  0x40   : > { %405 = vadd.xlane.f32.xlu0 %v404_v21 }
  0x42   : > { %411 = vadd.xlane.f32.xlu1 %v410_v24 }
  0x44   : > { %414 = vadd.xlane.f32.xlu0 %v413_v26 }
  0x46   : > { %408 = vadd.xlane.f32.xlu1 %v407_v28 }
  0x48   : > { %417 = vadd.xlane.f32.xlu0 %v416_v32 }
  0x4a   : > { %423 = vadd.xlane.f32.xlu1 %v422_v35 }
  0x4c   : > { %426 = vadd.xlane.f32.xlu0 %v425_v39 }
  0x4e   : > { %420 = vadd.xlane.f32.xlu1 %v419_v42 }
  0x50   : > { %429 = vadd.xlane.f32.xlu0 %v428_v46 }
  0x52   : > { %435 = vadd.xlane.f32.xlu1 %v434_v49 }
  0x54   : > { %438 = vadd.xlane.f32.xlu0 %v437_v53 }
  0x56   : > { %432 = vadd.xlane.f32.xlu1 %v431_v56 }
  0x58   : > { %441 = vadd.xlane.f32.xlu0 %v440_v59 }
  0x5a   : > { %447 = vadd.xlane.f32.xlu1 %v446_v10 }
  0x5c   : > { %450 = vadd.xlane.f32.xlu0 %v449_v1 }
  0x5e   : > { %444 = vadd.xlane.f32.xlu1 %v443_v5 }
  0x60   : > { %453 = vadd.xlane.f32.xlu0 %v452_v9 }
  0x62   : > { %456 = vadd.xlane.f32.xlu1 %v455_v12 }
  0xb1   : > { %v363_v14 = vpop.xlane.xlu0 %362 }
  0xb2   : > { %v495_v17 = vrot.slane %v363_v14, %v1010_v6 }
  0xb3   : > { %v376_v15 = vpop.xlane.xlu1 %375 }
  0xb4   : > { %v520_v21 = vrot.slane %v376_v15, %v1010_v6 }
  0xb5   : > { %v366_v16 = vpop.xlane.xlu0 %365 }
  0xb6   : > { %v500_v18 = vrot.slane %v366_v16, %v1063_v63 }
  0xb7   : > { %v379_v19 = vpop.xlane.xlu1 %378 }
  0xb8   : > { %v502_v22 = vsel %vm501_vm3, %v500_v18, %v495_v17  ;;  %v524_v23 = vrot.slane %v379_v19, %v1063_v63 }
  0xb9   : > { %v369_v24 = vpop.xlane.xlu0 %368 }
  0xba   : > { %v525_v4 = vsel %vm501_vm3, %v524_v23, %v520_v21  ;;  %v507_v25 = vrot.slane %v369_v24, %v1070_v11 }
  0xbb   : > { %v382_v7 = vpop.xlane.xlu1 %381 }
  0xbc   : > { %v509_v26 = vsel %vm508_vm4, %v507_v25, %v502_v22  ;;  %v529_v27 = vrot.slane %v382_v7, %v1070_v11 }
  0xbd   : > { %v373_v3 = vpop.xlane.xlu0 %372 }
  0xbe   : > { %v530_v28 = vsel %vm508_vm4, %v529_v27, %v525_v4  ;;  %v514_v29 = vrot.slane %v373_v3, %v1079_v20 }
  0xbf   : > { %v391_v30 = vpop.xlane.xlu1 %390 }
  0xc0   : > { %v516_v31 = vsel %vm515_vm5, %v514_v29, %v509_v26  ;;  %v543_v33 = vrot.slane %v391_v30, %v1063_v63 }
  0xc1   : > { %v388_v32 = vpop.xlane.xlu0 %387 }
  0xc2   : > { %v539_v34 = vrot.slane %v388_v32, %v1010_v6 }
  0xc3   : > { %v385_v35 = vpop.xlane.xlu1 %384 }
  0xc4   : > { %v544_v36 = vsel %vm501_vm3, %v543_v33, %v539_v34  ;;  %v534_v37 = vrot.slane %v385_v35, %v1079_v20 }
  0xc5   : > { %v394_v38 = vpop.xlane.xlu0 %393 }
  0xc6   : > { %v535_v39 = vsel %vm515_vm5, %v534_v37, %v530_v28  ;;  %v548_v40 = vrot.slane %v394_v38, %v1070_v11 }
  0xc7   : > { %v651_v41 = vsel %vm650_vm6, %v535_v39, %v516_v31  ;;  %v400_v42 = vpop.xlane.xlu1 %399 }
  0xc8   : > { %v549_v43 = vsel %vm508_vm4, %v548_v40, %v544_v36  ;;  %v558_v45 = vrot.slane %v400_v42, %v1010_v6 }
  0xc9   : > { %v403_v44 = vpop.xlane.xlu0 %402 }
  0xca   : > { %v562_v46 = vrot.slane %v403_v44, %v1063_v63 }
  0xcb   : > { %v397_v47 = vpop.xlane.xlu1 %396 }
  0xcc   : > { %v563_v48 = vsel %vm501_vm3, %v562_v46, %v558_v45  ;;  %v553_v49 = vrot.slane %v397_v47, %v1079_v20 }
  0xcd   : > { %v406_v50 = vpop.xlane.xlu0 %405 }
  0xce   : > { %v554_v51 = vsel %vm515_vm5, %v553_v49, %v549_v43  ;;  %v567_v52 = vrot.slane %v406_v50, %v1070_v11 }
  0xcf   : > { %v653_v53 = vsel %vm652_vm7, %v554_v51, %v651_v41  ;;  %v412_v54 = vpop.xlane.xlu1 %411 }
  0xd0   : > { %v568_v55 = vsel %vm508_vm4, %v567_v52, %v563_v48  ;;  %v577_v57 = vrot.slane %v412_v54, %v1010_v6 }
  0xd1   : > { %v415_v56 = vpop.xlane.xlu0 %414 }
  0xd2   : > { %v581_v58 = vrot.slane %v415_v56, %v1063_v63 }
  0xd3   : > { %v409_v59 = vpop.xlane.xlu1 %408 }
  0xd4   : > { %v582_v60 = vsel %vm501_vm3, %v581_v58, %v577_v57  ;;  %v572_v61 = vrot.slane %v409_v59, %v1079_v20 }
  0xd5   : > { %v418_v10 = vpop.xlane.xlu0 %417 }
  0xd6   : > { %v573_v62 = vsel %vm515_vm5, %v572_v61, %v568_v55  ;;  %v586_v0 = vrot.slane %v418_v10, %v1070_v11 }
  0xd7   : > { %v655_v1 = vsel %vm654_vm8, %v573_v62, %v653_v53  ;;  %v424_v2 = vpop.xlane.xlu1 %423 }
  0xd8   : > { %v587_v5 = vsel %vm508_vm4, %v586_v0, %v582_v60  ;;  %v596_v9 = vrot.slane %v424_v2, %v1010_v6 }
  0xd9   : > { %v427_v8 = vpop.xlane.xlu0 %426 }
  0xda   : > { %v600_v12 = vrot.slane %v427_v8, %v1063_v63 }
  0xdb   : > { %v421_v13 = vpop.xlane.xlu1 %420 }
  0xdc   : > { %v601_v14 = vsel %vm501_vm3, %v600_v12, %v596_v9  ;;  %v591_v15 = vrot.slane %v421_v13, %v1079_v20 }
  0xdd   : > { %v430_v16 = vpop.xlane.xlu0 %429 }
  0xde   : > { %v592_v17 = vsel %vm515_vm5, %v591_v15, %v587_v5  ;;  %v605_v18 = vrot.slane %v430_v16, %v1070_v11 }
  0xdf   : > { %v657_v19 = vsel %vm656_vm9, %v592_v17, %v655_v1  ;;  %v436_v21 = vpop.xlane.xlu1 %435 }
  0xe0   : > { %v606_v22 = vsel %vm508_vm4, %v605_v18, %v601_v14  ;;  %v615_v24 = vrot.slane %v436_v21, %v1010_v6 }
  0xe1   : > { %v439_v23 = vpop.xlane.xlu0 %438 }
  0xe2   : > { %v619_v4 = vrot.slane %v439_v23, %v1063_v63 }
  0xe3   : > { %v433_v25 = vpop.xlane.xlu1 %432 }
  0xe4   : > { %v620_v7 = vsel %vm501_vm3, %v619_v4, %v615_v24  ;;  %v610_v26 = vrot.slane %v433_v25, %v1079_v20 }
  0xe5   : > { %v442_v27 = vpop.xlane.xlu0 %441 }
  0xe6   : > { %v611_v3 = vsel %vm515_vm5, %v610_v26, %v606_v22  ;;  %v624_v28 = vrot.slane %v442_v27, %v1070_v11 }
  0xe7   : > { %v659_v29 = vsel %vm658_vm10, %v611_v3, %v657_v19  ;;  %v448_v30 = vpop.xlane.xlu1 %447 }
  0xe8   : > { %v625_v31 = vsel %vm508_vm4, %v624_v28, %v620_v7  ;;  %v634_v33 = vrot.slane %v448_v30, %v1010_v6 }
  0xe9   : > { %v451_v32 = vpop.xlane.xlu0 %450 }
  0xea   : > { %v638_v34 = vrot.slane %v451_v32, %v1063_v63  ;;  %v359_v63 = vld [vmem:[#allocation2] sm:$0xff] }
  0xeb   : > { %v445_v35 = vpop.xlane.xlu1 %444 }
  0xec   : > { %v639_v36 = vsel %vm501_vm3, %v638_v34, %v634_v33  ;;  %v629_v37 = vrot.slane %v445_v35, %v1079_v20 }
  0xed   : > { %v454_v38 = vpop.xlane.xlu0 %453 }
  0xee   : > { %v630_v39 = vsel %vm515_vm5, %v629_v37, %v625_v31  ;;  %v643_v40 = vrot.slane %v454_v38, %v1070_v11 }
  0xef   : > { %v661_v41 = vsel %vm660_vm11, %v630_v39, %v659_v29  ;;  %v457_v42 = vpop.xlane.xlu1 %456 }
  0xf0   : > { %v644_v43 = vsel %vm508_vm4, %v643_v40, %v639_v36  ;;  %v648_v6 = vrot.slane %v457_v42, %v1079_v20 }
  0xf2   : > { %v649_v44 = vsel %vm515_vm5, %v648_v6, %v644_v43 }
  0xf3   : > { %v663_v45 = vsel %vm662_vm12, %v649_v44, %v661_v41 }
  0xf4   : > { %v665_v46 = vadd.f32 %v663_v45, %v359_v63 }
  0xf6   : > { %667 = vst.msk [vmem:[#allocation2] sm:$0xff] %vm202_vm2, %v665_v46 }
  0xfd   : > { %v671_v11 = vld [vmem:[#allocation2] sm:$0xff] }
  0xfe   : > { %672 = vst.msk [vmem:[%s180_s8] sm:$0xff] %vm202_vm2, %v671_v11 }
  0xff   : > { %861 = shalt.err (!%p858_p6)
}
 0x100   : > { %s862_s27 = scalar_lea.hbm %s1179_s20, 128  ;;  %s866_s30 = scalar_lea.hbm %s1229_s2, 256 }
 0x101   : > { %p863_p7 = scmp.ne.s32.totalorder %s1179_s20, %s862_s27  ;;  %p867_p11 = scmp.lt.u32.totalorder %s1179_s20, %s1229_s2 }
 0x102   : > { %p868_p12 = scmp.lt.u32.totalorder %s866_s30, %s862_s27  ;;  %p870_p0 = scmp.lt.u32.totalorder %s862_s27, %s1179_s20 }
 0x103   : > { %p864_p9 = pnand %p863_p7, %p986_p4 }
 0x104   : > { %p869_p13 = por %p868_p12, %p867_p11 }
 0x105   : > { %p865_p10 = pneg %p864_p9 }
 0x106   : > { %p871_p1 = por %p870_p0, %p869_p13 }
 0x108   : > { %p872_p2 = pnand %p871_p1, %p865_p10 }
 0x10a   : > { %875 = shalt.err (!%p872_p2)
}
 0x10b   : > { %790 = dma.vmem_to_hbm [thread:$0]  (%p986_p4), %s1181_s15, 128, %s1179_s20, %s674_s23  }
 0x10c PF: > { %p796_p3 = scmp.ge.s32.totalorder %s926_s14, 2  ;;  %s699_s5 = sand.u32 1, %s906_s9  }
 0x10d   : > { %s700_s6 = scalar_lea.sflag [#allocation4], %s699_s5 }
 0x10e   : > { %p793_p5 = pnand %p796_p3, %p993_p8 }
 0x110   : > { %901 = dma.done.wait (!%p793_p5), %s700_s6, 128  }
 0x111   : > { %903 = vsyncadd (!%p793_p5), %s700_s6, 4294967168  ;;  %s15_s14 = sadd.s32 1, %s926_s14   ;;  %s1232_s9 = smov %s910_s10 }
 0x112   : > { %p12_p6 = scmp.ge.s32.totalorder %s15_s14, 4   ;;  %s1233_s10 = smov %s914_s11 }
 0x113   : > { %s1234_s11 = smov %s999_s22  ;;  %s1235_s12 = smov %s922_s13 }
 0x114   : > { %s1236_s13 = smov %s1238_s17  ;;  %14 = sbr.rel (!%p12_p6) target bundleno = 4 (0x4), region = 74 }
 0x11b   :  { %705 = vsyncpa [#allocation4], 1 }
 0x11c   :  { %707 = vsyncpa [#allocation4 + $0x1], 1 }

</bundles_post_ra>
